<compile_context>
chip_gen: v6e
topology: v6e:2x2x1
jax: 0.10.0
libtpu: 0.0.40
codegen_flags: <defaults>
</compile_context>

<pallas_src>
import jax
import jax.numpy as jnp
from jax.experimental import pallas as pl
from jax.experimental.pallas import tpu as pltpu


def _round_up(a, m):
    return (a + m - 1) // m * m


def mlp_kernel(x_ref, w1_ref, b1_ref, w2_ref, b2_ref, w3_ref, b3_ref, o_ref):
    # bf16 cast done in-kernel (removes a separate wrapper-side HBM pass).
    x = x_ref[...].astype(w1_ref.dtype)
    # Layer 1: Linear(input -> 2*hidden) + ReLU  (bf16 MXU, f32 accumulate)
    h1 = jnp.dot(x, w1_ref[...], preferred_element_type=jnp.float32)
    h1 = jnp.maximum(h1 + b1_ref[...], 0.0)          # bias + ReLU in f32
    # Layer 2: Linear(2*hidden -> hidden) + ReLU
    h2 = jnp.dot(h1.astype(w2_ref.dtype), w2_ref[...],
                 preferred_element_type=jnp.float32)
    h2 = jnp.maximum(h2 + b2_ref[...], 0.0)
    # Layer 3: Linear(hidden -> output), no activation
    out = jnp.dot(h2.astype(w3_ref.dtype), w3_ref[...],
                  preferred_element_type=jnp.float32) + b3_ref[...]
    o_ref[...] = out.astype(o_ref.dtype)


def mynn1_forward(x, params, *, tile_b=None, out_dtype=jnp.float32):
    """Fused MLP forward.

    x: [B, input_size] float array (cast to bf16 inside the kernel).
    params: (w1, b1, w2, b2, w3, b3) with weights [in, out] (bf16) and
            biases [1, out] (f32).  Returns [B, output_size] in out_dtype.
    """
    w1, b1, w2, b2, w3, b3 = params
    B, in_dim = x.shape
    n1, n2 = w1.shape[1], w2.shape[1]
    out_dim = w3.shape[1]

    # --- batch tiling: few, large grid steps (grid loop is serial on TPU) ---
    if tile_b is None:
        # Aim for ~2 grid steps (one per v7x TensorCore); cap at 2048 rows so
        # activations stay far below v5e's 16 MiB default scoped VMEM.
        tile_b = min(2048, _round_up(pl.cdiv(B, 2), 8))
    tile_b = int(max(8, min(_round_up(tile_b, 8), _round_up(B, 8))))
    grid = (pl.cdiv(B, tile_b),)   # no batch padding: boundary block is masked

    # --- VMEM budget: actual need (+headroom), never the v7x physical max ---
    param_bytes = sum(int(a.size) * a.dtype.itemsize
                      for a in (w1, b1, w2, b2, w3, b3))
    act_bytes = tile_b * (2 * 4 * in_dim        # x tile (f32, double-buffered)
                          + 2 * 4 * out_dim     # out tile (double-buffered)
                          + 6 * (n1 + n2))      # f32 + bf16 hidden activations
    vmem_limit = int(min(32 << 20, max(8 << 20, 2 * (act_bytes + 2 * param_bytes))))

    # --- advisory cost estimate so XLA schedules the tiny kernel sensibly ---
    flops = 2 * B * (in_dim * n1 + n1 * n2 + n2 * out_dim)
    bytes_accessed = (int(x.size) * x.dtype.itemsize
                      + B * out_dim * jnp.dtype(out_dtype).itemsize
                      + param_bytes)
    cost = pl.CostEstimate(flops=int(flops), transcendentals=0,
                           bytes_accessed=int(bytes_accessed))

    def whole(arr):
        # Whole-array block, same block for every grid step (stays resident).
        nd = arr.ndim
        return pl.BlockSpec(arr.shape, lambda i, _nd=nd: (0,) * _nd)

    def run(dim_semantics):
        return pl.pallas_call(
            mlp_kernel,
            out_shape=jax.ShapeDtypeStruct((B, out_dim), out_dtype),
            grid_spec=pltpu.PrefetchScalarGridSpec(
                num_scalar_prefetch=0,
                grid=grid,
                in_specs=[
                    pl.BlockSpec((tile_b, in_dim), lambda i: (i, 0)),  # x tile
                    whole(w1), whole(b1),
                    whole(w2), whole(b2),
                    whole(w3), whole(b3),
                ],
                out_specs=pl.BlockSpec((tile_b, out_dim), lambda i: (i, 0)),
            ),
            compiler_params=pltpu.CompilerParams(
                dimension_semantics=dim_semantics,
                vmem_limit_bytes=vmem_limit,
            ),
            cost_estimate=cost,
        )(x, w1, b1, w2, b2, w3, b3)

    # Prefer explicit cross-core sharding (v7x has 2 TensorCores); fall back to
    # plain "parallel" on chips / JAX versions where CORE_PARALLEL is rejected.
    core_parallel = getattr(pltpu, "CORE_PARALLEL", None)
    if core_parallel is not None and grid[0] >= 2:
        try:
            return run((core_parallel,))
        except Exception:
            pass
    return run(("parallel",))


def init_params(key, input_size, output_size, hidden_size=128):
    """Synthetic nn.Linear-style init. Weights stored [in, out] in bf16,
    biases [1, out] in f32.  No padding needed: all shapes are used as-is."""
    dims = [(input_size, hidden_size * 2),
            (hidden_size * 2, hidden_size),
            (hidden_size, output_size)]
    params = []
    for fan_in, fan_out in dims:
        key, kw, kb = jax.random.split(key, 3)
        bound = 1.0 / jnp.sqrt(fan_in)
        w = jax.random.uniform(kw, (fan_in, fan_out), jnp.float32,
                               minval=-bound, maxval=bound).astype(jnp.bfloat16)
        b = jax.random.uniform(kb, (1, fan_out), jnp.float32,
                               minval=-bound, maxval=bound)
        params += [w, b]
    return tuple(params)


def reference_forward(x, params):
    """Pure-JAX reference reproducing the kernel's bf16-operand / f32-accumulate
    datapath (comparison isolates accumulation-order differences only)."""
    w1, b1, w2, b2, w3, b3 = params
    f32 = jnp.float32
    xq = x.astype(jnp.bfloat16).astype(f32)
    h1 = jnp.maximum(xq @ w1.astype(f32) + b1, 0.0)
    h1q = h1.astype(jnp.bfloat16).astype(f32)
    h2 = jnp.maximum(h1q @ w2.astype(f32) + b2, 0.0)
    h2q = h2.astype(jnp.bfloat16).astype(f32)
    return h2q @ w3.astype(f32) + b3


if __name__ == "__main__":
    key = jax.random.PRNGKey(0)
    # Demo sizes: B=512 -> auto tile_b=256, grid of 2 (one step per v7x TC,
    # only one extra ~0.35 us step on single-core chips).
    B, input_size, output_size, hidden_size = 512, 32, 16, 128

    kx, kp = jax.random.split(key)
    x = jax.random.normal(kx, (B, input_size), jnp.float32)
    params = init_params(kp, input_size, output_size, hidden_size)

    out = mynn1_forward(x, params)
    out = jax.block_until_ready(out)

    ref = reference_forward(x, params)
    assert out.shape == (B, output_size)
    assert jnp.allclose(out, ref, atol=1e-3, rtol=1e-3), (
        float(jnp.max(jnp.abs(out - ref))))

    print("KERNEL_OK")
</pallas_src>

<mosaic_0001>
module attributes {stable_mosaic.version = 11 : i64} {
  func.func @mlp_kernel(%arg0: i32, %arg1: memref<256x32xf32, #tpu.memory_space<vmem>>, %arg2: memref<32x256xbf16, #tpu.memory_space<vmem>>, %arg3: memref<1x256xf32, #tpu.memory_space<vmem>>, %arg4: memref<256x128xbf16, #tpu.memory_space<vmem>>, %arg5: memref<1x128xf32, #tpu.memory_space<vmem>>, %arg6: memref<128x16xbf16, #tpu.memory_space<vmem>>, %arg7: memref<1x16xf32, #tpu.memory_space<vmem>>, %arg8: memref<256x16xf32, #tpu.memory_space<vmem>>) attributes {dimension_semantics = [#tpu.dimension_semantics<core_parallel>], iteration_bounds = array<i64: 2>, scalar_prefetch = 0 : i64, scratch_operands = 0 : i64, tpu.core_type = #tpu.core_type<tc>, window_params = [{transform_indices = @transform_0, window_bounds = array<i64: 256, 32>}, {pipeline_mode = #tpu.pipeline_mode<synchronous>, transform_indices = @transform_1, window_bounds = array<i64: 32, 256>}, {pipeline_mode = #tpu.pipeline_mode<synchronous>, transform_indices = @transform_2, window_bounds = array<i64: 1, 256>}, {pipeline_mode = #tpu.pipeline_mode<synchronous>, transform_indices = @transform_3, window_bounds = array<i64: 256, 128>}, {pipeline_mode = #tpu.pipeline_mode<synchronous>, transform_indices = @transform_4, window_bounds = array<i64: 1, 128>}, {pipeline_mode = #tpu.pipeline_mode<synchronous>, transform_indices = @transform_5, window_bounds = array<i64: 128, 16>}, {pipeline_mode = #tpu.pipeline_mode<synchronous>, transform_indices = @transform_6, window_bounds = array<i64: 1, 16>}, {transform_indices = @transform_7, window_bounds = array<i64: 256, 16>}]} {
    %c0 = arith.constant 0 : index
    %c0_0 = arith.constant 0 : index
    %0 = vector.load %arg1[%c0, %c0_0] : memref<256x32xf32, #tpu.memory_space<vmem>>, vector<256x32xf32>
    %1 = arith.truncf %0 : vector<256x32xf32> to vector<256x32xbf16>
    %c0_1 = arith.constant 0 : index
    %c0_2 = arith.constant 0 : index
    %2 = vector.load %arg2[%c0_1, %c0_2] : memref<32x256xbf16, #tpu.memory_space<vmem>>, vector<32x256xbf16>
    %cst = arith.constant dense<0.000000e+00> : vector<256x256xf32>
    %3 = tpu.matmul %1, %2, %cst {dimension_numbers = #tpu.dot_dimension_numbers<[1], [0], [0], [1], [0, 0, 1, 1], [], []>} : vector<256x32xbf16>, vector<32x256xbf16>, vector<256x256xf32> -> vector<256x256xf32>
    %c0_3 = arith.constant 0 : index
    %c0_4 = arith.constant 0 : index
    %4 = vector.load %arg3[%c0_3, %c0_4] : memref<1x256xf32, #tpu.memory_space<vmem>>, vector<1x256xf32>
    %5 = vector.broadcast %4 : vector<1x256xf32> to vector<256x256xf32>
    %6 = arith.addf %3, %5 : vector<256x256xf32>
    %cst_5 = arith.constant 0.000000e+00 : f32
    %7 = vector.broadcast %cst_5 : f32 to vector<256x256xf32>
    %8 = arith.maximumf %6, %7 : vector<256x256xf32>
    %9 = arith.truncf %8 : vector<256x256xf32> to vector<256x256xbf16>
    %c0_6 = arith.constant 0 : index
    %c0_7 = arith.constant 0 : index
    %10 = vector.load %arg4[%c0_6, %c0_7] : memref<256x128xbf16, #tpu.memory_space<vmem>>, vector<256x128xbf16>
    %cst_8 = arith.constant dense<0.000000e+00> : vector<256x128xf32>
    %11 = tpu.matmul %9, %10, %cst_8 {dimension_numbers = #tpu.dot_dimension_numbers<[1], [0], [0], [1], [0, 0, 1, 1], [], []>} : vector<256x256xbf16>, vector<256x128xbf16>, vector<256x128xf32> -> vector<256x128xf32>
    %c0_9 = arith.constant 0 : index
    %c0_10 = arith.constant 0 : index
    %12 = vector.load %arg5[%c0_9, %c0_10] : memref<1x128xf32, #tpu.memory_space<vmem>>, vector<1x128xf32>
    %13 = vector.broadcast %12 : vector<1x128xf32> to vector<256x128xf32>
    %14 = arith.addf %11, %13 : vector<256x128xf32>
    %cst_11 = arith.constant 0.000000e+00 : f32
    %15 = vector.broadcast %cst_11 : f32 to vector<256x128xf32>
    %16 = arith.maximumf %14, %15 : vector<256x128xf32>
    %17 = arith.truncf %16 : vector<256x128xf32> to vector<256x128xbf16>
    %c0_12 = arith.constant 0 : index
    %c0_13 = arith.constant 0 : index
    %18 = vector.load %arg6[%c0_12, %c0_13] : memref<128x16xbf16, #tpu.memory_space<vmem>>, vector<128x16xbf16>
    %cst_14 = arith.constant dense<0.000000e+00> : vector<256x16xf32>
    %19 = tpu.matmul %17, %18, %cst_14 {dimension_numbers = #tpu.dot_dimension_numbers<[1], [0], [0], [1], [0, 0, 1, 1], [], []>} : vector<256x128xbf16>, vector<128x16xbf16>, vector<256x16xf32> -> vector<256x16xf32>
    %c0_15 = arith.constant 0 : index
    %c0_16 = arith.constant 0 : index
    %20 = vector.load %arg7[%c0_15, %c0_16] : memref<1x16xf32, #tpu.memory_space<vmem>>, vector<1x16xf32>
    %21 = vector.broadcast %20 : vector<1x16xf32> to vector<256x16xf32>
    %22 = arith.addf %19, %21 : vector<256x16xf32>
    %c0_17 = arith.constant 0 : index
    %c0_18 = arith.constant 0 : index
    %23 = vector.load %arg8[%c0_17, %c0_18] : memref<256x16xf32, #tpu.memory_space<vmem>>, vector<256x16xf32>
    tpu.vector_store %arg8[%c0_17, %c0_18], %22 {strides = array<i32>} : memref<256x16xf32, #tpu.memory_space<vmem>>, vector<256x16xf32>,
    return
  }
  func.func @transform_0(%arg0: i32) -> (i32, i32) {
    %c0_i32 = arith.constant 0 : i32
    %c0_i32_0 = arith.constant 0 : i32
    return %arg0, %c0_i32 : i32, i32
  }
  func.func @transform_1(%arg0: i32) -> (i32, i32) {
    %c0_i32 = arith.constant 0 : i32
    %c0_i32_0 = arith.constant 0 : i32
    %c0_i32_1 = arith.constant 0 : i32
    return %c0_i32, %c0_i32_0 : i32, i32
  }
  func.func @transform_2(%arg0: i32) -> (i32, i32) {
    %c0_i32 = arith.constant 0 : i32
    %c0_i32_0 = arith.constant 0 : i32
    %c0_i32_1 = arith.constant 0 : i32
    return %c0_i32, %c0_i32_0 : i32, i32
  }
  func.func @transform_3(%arg0: i32) -> (i32, i32) {
    %c0_i32 = arith.constant 0 : i32
    %c0_i32_0 = arith.constant 0 : i32
    %c0_i32_1 = arith.constant 0 : i32
    return %c0_i32, %c0_i32_0 : i32, i32
  }
  func.func @transform_4(%arg0: i32) -> (i32, i32) {
    %c0_i32 = arith.constant 0 : i32
    %c0_i32_0 = arith.constant 0 : i32
    %c0_i32_1 = arith.constant 0 : i32
    return %c0_i32, %c0_i32_0 : i32, i32
  }
  func.func @transform_5(%arg0: i32) -> (i32, i32) {
    %c0_i32 = arith.constant 0 : i32
    %c0_i32_0 = arith.constant 0 : i32
    %c0_i32_1 = arith.constant 0 : i32
    return %c0_i32, %c0_i32_0 : i32, i32
  }
  func.func @transform_6(%arg0: i32) -> (i32, i32) {
    %c0_i32 = arith.constant 0 : i32
    %c0_i32_0 = arith.constant 0 : i32
    %c0_i32_1 = arith.constant 0 : i32
    return %c0_i32, %c0_i32_0 : i32, i32
  }
  func.func @transform_7(%arg0: i32) -> (i32, i32) {
    %c0_i32 = arith.constant 0 : i32
    %c0_i32_0 = arith.constant 0 : i32
    return %arg0, %c0_i32 : i32, i32
  }
}

module attributes {stable_mosaic.version = 11 : i64} {
  func.func @mlp_kernel(%arg0: i32, %arg1: memref<256x32xf32, #tpu.memory_space<vmem>>, %arg2: memref<32x256xbf16, #tpu.memory_space<vmem>>, %arg3: memref<1x256xf32, #tpu.memory_space<vmem>>, %arg4: memref<256x128xbf16, #tpu.memory_space<vmem>>, %arg5: memref<1x128xf32, #tpu.memory_space<vmem>>, %arg6: memref<128x16xbf16, #tpu.memory_space<vmem>>, %arg7: memref<1x16xf32, #tpu.memory_space<vmem>>, %arg8: memref<256x16xf32, #tpu.memory_space<vmem>>) attributes {dimension_semantics = [#tpu.dimension_semantics<parallel>], iteration_bounds = array<i64: 2>, scalar_prefetch = 0 : i64, scratch_operands = 0 : i64, tpu.core_type = #tpu.core_type<tc>, window_params = [{transform_indices = @transform_0, window_bounds = array<i64: 256, 32>}, {pipeline_mode = #tpu.pipeline_mode<synchronous>, transform_indices = @transform_1, window_bounds = array<i64: 32, 256>}, {pipeline_mode = #tpu.pipeline_mode<synchronous>, transform_indices = @transform_2, window_bounds = array<i64: 1, 256>}, {pipeline_mode = #tpu.pipeline_mode<synchronous>, transform_indices = @transform_3, window_bounds = array<i64: 256, 128>}, {pipeline_mode = #tpu.pipeline_mode<synchronous>, transform_indices = @transform_4, window_bounds = array<i64: 1, 128>}, {pipeline_mode = #tpu.pipeline_mode<synchronous>, transform_indices = @transform_5, window_bounds = array<i64: 128, 16>}, {pipeline_mode = #tpu.pipeline_mode<synchronous>, transform_indices = @transform_6, window_bounds = array<i64: 1, 16>}, {transform_indices = @transform_7, window_bounds = array<i64: 256, 16>}]} {
    %c0 = arith.constant 0 : index
    %c0_0 = arith.constant 0 : index
    %0 = vector.load %arg1[%c0, %c0_0] : memref<256x32xf32, #tpu.memory_space<vmem>>, vector<256x32xf32>
    %1 = arith.truncf %0 : vector<256x32xf32> to vector<256x32xbf16>
    %c0_1 = arith.constant 0 : index
    %c0_2 = arith.constant 0 : index
    %2 = vector.load %arg2[%c0_1, %c0_2] : memref<32x256xbf16, #tpu.memory_space<vmem>>, vector<32x256xbf16>
    %cst = arith.constant dense<0.000000e+00> : vector<256x256xf32>
    %3 = tpu.matmul %1, %2, %cst {dimension_numbers = #tpu.dot_dimension_numbers<[1], [0], [0], [1], [0, 0, 1, 1], [], []>} : vector<256x32xbf16>, vector<32x256xbf16>, vector<256x256xf32> -> vector<256x256xf32>
    %c0_3 = arith.constant 0 : index
    %c0_4 = arith.constant 0 : index
    %4 = vector.load %arg3[%c0_3, %c0_4] : memref<1x256xf32, #tpu.memory_space<vmem>>, vector<1x256xf32>
    %5 = vector.broadcast %4 : vector<1x256xf32> to vector<256x256xf32>
    %6 = arith.addf %3, %5 : vector<256x256xf32>
    %cst_5 = arith.constant 0.000000e+00 : f32
    %7 = vector.broadcast %cst_5 : f32 to vector<256x256xf32>
    %8 = arith.maximumf %6, %7 : vector<256x256xf32>
    %9 = arith.truncf %8 : vector<256x256xf32> to vector<256x256xbf16>
    %c0_6 = arith.constant 0 : index
    %c0_7 = arith.constant 0 : index
    %10 = vector.load %arg4[%c0_6, %c0_7] : memref<256x128xbf16, #tpu.memory_space<vmem>>, vector<256x128xbf16>
    %cst_8 = arith.constant dense<0.000000e+00> : vector<256x128xf32>
    %11 = tpu.matmul %9, %10, %cst_8 {dimension_numbers = #tpu.dot_dimension_numbers<[1], [0], [0], [1], [0, 0, 1, 1], [], []>} : vector<256x256xbf16>, vector<256x128xbf16>, vector<256x128xf32> -> vector<256x128xf32>
    %c0_9 = arith.constant 0 : index
    %c0_10 = arith.constant 0 : index
    %12 = vector.load %arg5[%c0_9, %c0_10] : memref<1x128xf32, #tpu.memory_space<vmem>>, vector<1x128xf32>
    %13 = vector.broadcast %12 : vector<1x128xf32> to vector<256x128xf32>
    %14 = arith.addf %11, %13 : vector<256x128xf32>
    %cst_11 = arith.constant 0.000000e+00 : f32
    %15 = vector.broadcast %cst_11 : f32 to vector<256x128xf32>
    %16 = arith.maximumf %14, %15 : vector<256x128xf32>
    %17 = arith.truncf %16 : vector<256x128xf32> to vector<256x128xbf16>
    %c0_12 = arith.constant 0 : index
    %c0_13 = arith.constant 0 : index
    %18 = vector.load %arg6[%c0_12, %c0_13] : memref<128x16xbf16, #tpu.memory_space<vmem>>, vector<128x16xbf16>
    %cst_14 = arith.constant dense<0.000000e+00> : vector<256x16xf32>
    %19 = tpu.matmul %17, %18, %cst_14 {dimension_numbers = #tpu.dot_dimension_numbers<[1], [0], [0], [1], [0, 0, 1, 1], [], []>} : vector<256x128xbf16>, vector<128x16xbf16>, vector<256x16xf32> -> vector<256x16xf32>
    %c0_15 = arith.constant 0 : index
    %c0_16 = arith.constant 0 : index
    %20 = vector.load %arg7[%c0_15, %c0_16] : memref<1x16xf32, #tpu.memory_space<vmem>>, vector<1x16xf32>
    %21 = vector.broadcast %20 : vector<1x16xf32> to vector<256x16xf32>
    %22 = arith.addf %19, %21 : vector<256x16xf32>
    %c0_17 = arith.constant 0 : index
    %c0_18 = arith.constant 0 : index
    %23 = vector.load %arg8[%c0_17, %c0_18] : memref<256x16xf32, #tpu.memory_space<vmem>>, vector<256x16xf32>
    tpu.vector_store %arg8[%c0_17, %c0_18], %22 {strides = array<i32>} : memref<256x16xf32, #tpu.memory_space<vmem>>, vector<256x16xf32>,
    return
  }
  func.func @transform_0(%arg0: i32) -> (i32, i32) {
    %c0_i32 = arith.constant 0 : i32
    %c0_i32_0 = arith.constant 0 : i32
    return %arg0, %c0_i32 : i32, i32
  }
  func.func @transform_1(%arg0: i32) -> (i32, i32) {
    %c0_i32 = arith.constant 0 : i32
    %c0_i32_0 = arith.constant 0 : i32
    %c0_i32_1 = arith.constant 0 : i32
    return %c0_i32, %c0_i32_0 : i32, i32
  }
  func.func @transform_2(%arg0: i32) -> (i32, i32) {
    %c0_i32 = arith.constant 0 : i32
    %c0_i32_0 = arith.constant 0 : i32
    %c0_i32_1 = arith.constant 0 : i32
    return %c0_i32, %c0_i32_0 : i32, i32
  }
  func.func @transform_3(%arg0: i32) -> (i32, i32) {
    %c0_i32 = arith.constant 0 : i32
    %c0_i32_0 = arith.constant 0 : i32
    %c0_i32_1 = arith.constant 0 : i32
    return %c0_i32, %c0_i32_0 : i32, i32
  }
  func.func @transform_4(%arg0: i32) -> (i32, i32) {
    %c0_i32 = arith.constant 0 : i32
    %c0_i32_0 = arith.constant 0 : i32
    %c0_i32_1 = arith.constant 0 : i32
    return %c0_i32, %c0_i32_0 : i32, i32
  }
  func.func @transform_5(%arg0: i32) -> (i32, i32) {
    %c0_i32 = arith.constant 0 : i32
    %c0_i32_0 = arith.constant 0 : i32
    %c0_i32_1 = arith.constant 0 : i32
    return %c0_i32, %c0_i32_0 : i32, i32
  }
  func.func @transform_6(%arg0: i32) -> (i32, i32) {
    %c0_i32 = arith.constant 0 : i32
    %c0_i32_0 = arith.constant 0 : i32
    %c0_i32_1 = arith.constant 0 : i32
    return %c0_i32, %c0_i32_0 : i32, i32
  }
  func.func @transform_7(%arg0: i32) -> (i32, i32) {
    %c0_i32 = arith.constant 0 : i32
    %c0_i32_0 = arith.constant 0 : i32
    return %arg0, %c0_i32 : i32, i32
  }
}

</mosaic_0001>

<bundles_post_ra>
// kernel: tpu_custom_call.1
= control target key start
LH: loop header
LB: loop body
LE: loop exit
PB: predicated region body
PF: predicated region fallthrough
CT: control target
= control target key end

     0   :  { %s1703_s24 = smov 0   ;;  %s2112_s0 = inlined_call_operand.vmem [shape: f32[512,32], index: 0, kind: input, shape index: {}]   ;;  %s2113_s1 = inlined_call_operand.vmem [shape: bf16[32,256], index: 1, kind: input, shape index: {}]   ;;  %s2114_s2 = inlined_call_operand.vmem [shape: f32[1,256], index: 2, kind: input, shape index: {}]   ;;  %s2115_s3 = inlined_call_operand.vmem [shape: bf16[256,128], index: 3, kind: input, shape index: {}]   ;;  %s2116_s4 = inlined_call_operand.vmem [shape: f32[1,128], index: 4, kind: input, shape index: {}]   ;;  %s2117_s5 = inlined_call_operand.vmem [shape: bf16[128,16], index: 5, kind: input, shape index: {}]   ;;  %s2118_s6 = inlined_call_operand.vmem [shape: f32[1,16], index: 6, kind: input, shape index: {}]   ;;  %s2119_s7 = inlined_call_operand.vmem [shape: f32[512,16], index: 7, kind: output, shape index: {}]  }
   0x1 LB: > { %s1370_s25 = sadd.s32 4294967295, %s1660_s24   ;;  %p1374_p0 = scmp.ge.s32.totalorder %s1660_s24, 1  ;;  %s1660_s24 = sphi %s1703_s24, %s17_s24  }
   0x2   : > { %p238_p1 = scmp.lt.s32.totalorder %s1660_s24, 3 }
   0x4   : > { %p239_p2 = pnand %p1374_p0, %p238_p1 }
   0x5   : > { %s1375_s28 = sshll.u32 (!%p239_p2), %s1370_s25, 5 }
   0x6   : > { %242 = sbr.rel (%p239_p2) target bundleno = 756 (0x2f4), region = 48  ;;  %p271_p3 = scmp.lt.s32.totalorder (!%p239_p2), %s1375_s28, 63 }
   0xb   : > { %v1624_v0 = vld [vmem:[%s2113_s1 + $0x14] ss:$8 sps:$4 sm:$0xff]   ;;  %v1626_v1 = vld [vmem:[%s2113_s1 + $0x10] ss:$8 sps:$4 sm:$0xff]   ;;  %v1662_v2 = vmov 0   ;;  %s2121_s28 = smov (!%p271_p3, %s1375_s28), 63 }
   0xc   : > { %448 = vmatprep.mubr.bf16.mxu0 %v1662_v2  ;;  %568 = vmatprep.mubr.bf16.mxu1 %v1662_v2  ;;  %v1627_v3 = vld [vmem:[%s2113_s1 + $0x4] ss:$8 sps:$4 sm:$0xff]   ;;  %v1629_v4 = vld [vmem:[%s2113_s1] ss:$8 sps:$4 sm:$0xff]   ;;  %v1630_v5 = vld [vmem:[%s2115_s3 + $0x78] sm:$0xff]   ;;  %s1376_s14 = sshll.u32 %s2121_s28, 3 }
   0xd   : > { %428 = vmatprep.subr.bf16.mxu0 %v1624_v0  ;;  %1611 = vmatprep.subr.bf16.mxu1 %v1624_v0  ;;  %s1736_s17 = scalar_lea.vmem %s2112_s0, %s1376_s14  ;;  %vm367_vm0 = vcmask 261120   ;;  %v1631_v15 = vld [vmem:[%s2115_s3 + $0x38] sm:$0xff]   ;;  %v1632_v16 = vld [vmem:[%s2115_s3 + $0x70] sm:$0xff]   ;;  %v1634_v22 = vld [vmem:[%s2115_s3 + $0x68] sm:$0xff]   ;;  %s2011_s11 = scalar_lea.vmem %s2119_s7, %s1376_s14  ;;  %vm1281_vm1 = vcmask 130048  }
   0xe   : > { %429 = vmatpush1.bf16.msra.mxu0 %v1626_v1  ;;  %1613 = vmatpush1.bf16.msra.mxu1 %v1626_v1  ;;  %v283_v6 = vld [vmem:[%s1736_s17] sm:$0xff]  ;;  %v284_v7 = vld [vmem:[%s1736_s17 + $0x8] sm:$0xff]  ;;  %v285_v9 = vld [vmem:[%s1736_s17 + $0x10] sm:$0xff] }
   0xf   : > { %430 = vmatprep.subr.bf16.mxu0 %v1627_v3  ;;  %1612 = vmatprep.subr.bf16.mxu1 %v1627_v3  ;;  %v315_v8 = vpack.c.bf16 %v284_v7, %v283_v6  ;;  %v286_v10 = vld [vmem:[%s1736_s17 + $0x18] sm:$0xff]  ;;  %v307_v12 = vld [vmem:[%s1736_s17 + $0xc0] sm:$0xff]  ;;  %v308_v13 = vld [vmem:[%s1736_s17 + $0xc8] sm:$0xff]  ;;  %v337_v6 = vlaneseq }
  0x10   : > { %v316_v11 = vpack.c.bf16 %v286_v10, %v285_v9  ;;  %v327_v14 = vpack.c.bf16 %v308_v13, %v307_v12  ;;  %v287_v17 = vld [vmem:[%s1736_s17 + $0x20] sm:$0xff]  ;;  %v288_v18 = vld [vmem:[%s1736_s17 + $0x28] sm:$0xff]  ;;  %v309_v19 = vld [vmem:[%s1736_s17 + $0xd0] sm:$0xff] }
  0x11   : > { %v310_v20 = vld [vmem:[%s1736_s17 + $0xd8] sm:$0xff]  ;;  %v1633_v21 = vld [vmem:[%s2115_s3 + $0x30] sm:$0xff]   ;;  %v317_v23 = vpack.c.bf16 %v288_v18, %v287_v17  ;;  %v1635_v25 = vld [vmem:[%s2115_s3 + $0x28] sm:$0xff]   ;;  %v338_v7 = vshrl.u32 %v337_v6, 7 }
  0x12   : > { %431 = vmatpush1.bf16.msra.mxu0 %v1629_v4  ;;  %1614 = vmatpush1.bf16.msra.mxu1 %v1629_v4  ;;  %v328_v24 = vpack.c.bf16 %v310_v20, %v309_v19  ;;  %v1636_v26 = vld [vmem:[%s2115_s3 + $0x60] sm:$0xff]   ;;  %v289_v27 = vld [vmem:[%s1736_s17 + $0x30] sm:$0xff]  ;;  %v290_v28 = vld [vmem:[%s1736_s17 + $0x38] sm:$0xff] }
  0x13   : > { %1427 = vmatprep.subr.bf16.mxu1 %v1630_v5  ;;  %v311_v29 = vld [vmem:[%s1736_s17 + $0xe0] sm:$0xff]  ;;  %v312_v30 = vld [vmem:[%s1736_s17 + $0xe8] sm:$0xff]  ;;  %v1638_v32 = vld [vmem:[%s2115_s3 + $0x58] sm:$0xff]   ;;  %v318_v33 = vpack.c.bf16 %v290_v28, %v289_v27  ;;  %v339_v9 = vsub.s32 0, %v338_v7 }
  0x14   : > { %v1637_v31 = vld [vmem:[%s2115_s3 + $0x20] sm:$0xff]   ;;  %v329_v34 = vpack.c.bf16 %v312_v30, %v311_v29  ;;  %v1639_v35 = vld [vmem:[%s2115_s3 + $0x18] sm:$0xff]   ;;  %v292_v37 = vld [vmem:[%s1736_s17 + $0x48] sm:$0xff] }
  0x15   : > { %1383 = vmatmul.mubr.msk.bf16.vlgmr.msra.gmra.mxu0 %vm367_vm0, %v315_v8  ;;  %1395 = vmatmul.mubr.msk.bf16.vlgmr.msra.gmra.mxu1 %vm367_vm0, %v327_v14  ;;  %v291_v36 = vld [vmem:[%s1736_s17 + $0x40] sm:$0xff]  ;;  %v313_v38 = vld [vmem:[%s1736_s17 + $0xf0] sm:$0xff]  ;;  %v314_v39 = vld [vmem:[%s1736_s17 + $0xf8] sm:$0xff]  ;;  %v343_v8 = vsub.s32 1, %v338_v7 }
  0x16   : > { %458 = vmatprep.mubr.bf16.mxu0 %v1662_v2  ;;  %578 = vmatprep.mubr.bf16.mxu1 %v1662_v2  ;;  %v319_v40 = vpack.c.bf16 %v292_v37, %v291_v36  ;;  %v330_v41 = vpack.c.bf16 %v314_v39, %v313_v38  ;;  %v293_v42 = vld [vmem:[%s1736_s17 + $0x50] sm:$0xff]  ;;  %v294_v43 = vld [vmem:[%s1736_s17 + $0x58] sm:$0xff]  ;;  %v295_v45 = vld [vmem:[%s1736_s17 + $0x60] sm:$0xff] }
  0x17   : > { %1428 = vmatpush3.bf16.msra.mxu1 %v1631_v15  ;;  %v320_v44 = vpack.c.bf16 %v294_v43, %v293_v42  ;;  %v296_v46 = vld [vmem:[%s1736_s17 + $0x68] sm:$0xff]  ;;  %v297_v48 = vld [vmem:[%s1736_s17 + $0x70] sm:$0xff]  ;;  %v298_v49 = vld [vmem:[%s1736_s17 + $0x78] sm:$0xff] }
  0x18   : > { %1429 = vmatprep.subr.bf16.mxu1 %v1632_v16  ;;  %v321_v47 = vpack.c.bf16 %v296_v46, %v295_v45  ;;  %v322_v50 = vpack.c.bf16 %v298_v49, %v297_v48  ;;  %v299_v51 = vld [vmem:[%s1736_s17 + $0x80] sm:$0xff]  ;;  %v300_v52 = vld [vmem:[%s1736_s17 + $0x88] sm:$0xff]  ;;  %v1640_v54 = vld [vmem:[%s2115_s3 + $0x50] sm:$0xff]  }
  0x19   : > { %v323_v53 = vpack.c.bf16 %v300_v52, %v299_v51  ;;  %v301_v55 = vld [vmem:[%s1736_s17 + $0x90] sm:$0xff]  ;;  %v302_v56 = vld [vmem:[%s1736_s17 + $0x98] sm:$0xff]  ;;  %v1642_v59 = vld [vmem:[%s2115_s3 + $0x48] sm:$0xff]  }
  0x1a   : > { %v1641_v57 = vld [vmem:[%s2115_s3 + $0x10] sm:$0xff]   ;;  %v324_v58 = vpack.c.bf16 %v302_v56, %v301_v55  ;;  %v1643_v60 = vld [vmem:[%s2115_s3 + $0x8] sm:$0xff]   ;;  %v1644_v61 = vld [vmem:[%s2115_s3 + $0x40] sm:$0xff]  }
  0x1b   : > { %1430 = vmatpush3.bf16.msra.mxu1 %v1633_v21  ;;  %v303_v62 = vld [vmem:[%s1736_s17 + $0xa0] sm:$0xff]  ;;  %v304_v63 = vld [vmem:[%s1736_s17 + $0xa8] sm:$0xff]  ;;  %v305_v3 = vld [vmem:[%s1736_s17 + $0xb0] sm:$0xff] }
  0x1c   : > { %1431 = vmatprep.subr.bf16.mxu1 %v1634_v22  ;;  %v1645_v0 = vld [vmem:[%s2115_s3] sm:$0xff]   ;;  %v325_v1 = vpack.c.bf16 %v304_v63, %v303_v62  ;;  %v306_v4 = vld [vmem:[%s1736_s17 + $0xb8] sm:$0xff]  ;;  %v1647_v20 = vld [vmem:[%s2117_s5 + $0x30] sm:$0xff]  }
  0x1d   : > { %1384 = vmatmul.mubr.msk.bf16.gmra.mxu0 %vm367_vm0, %v316_v11  ;;  %1396 = vmatmul.mubr.msk.bf16.gmra.mxu1 %vm367_vm0, %v328_v24  ;;  %v326_v5 = vpack.c.bf16 %v306_v4, %v305_v3  ;;  %v335_v10 = vld [vmem:[%s2114_s2] sm:$0x3]  ;;  %v1646_v19 = vld [vmem:[%s2117_s5 + $0x38] sm:$0xff]   ;;  %v1648_v28 = vld [vmem:[%s2117_s5 + $0x28] sm:$0xff]  }
  0x1e   : > { %468 = vmatprep.mubr.bf16.mxu0 %v1662_v2  ;;  %588 = vmatprep.mubr.bf16.mxu1 %v1662_v2  ;;  %v1848_v12 = vrot.slane %v335_v10, %v343_v8  ;;  %v1850_v13 = vrot.slane %v335_v10, %v339_v9 }
  0x1f   : > { %1432 = vmatpush3.bf16.msra.mxu1 %v1635_v25  ;;  %1563 = vmatprep.subr.bf16.mxu0 %v1646_v19 }
  0x20   : > { %1433 = vmatprep.subr.bf16.mxu1 %v1636_v26  ;;  %1564 = vmatpush3.bf16.msra.mxu0 %v1646_v19 }
  0x21   : > { %1565 = vmatprep.subr.bf16.mxu0 %v1647_v20 }
  0x23   : > { %1434 = vmatpush3.bf16.msra.mxu1 %v1637_v31 }
  0x24   : > { %1435 = vmatprep.subr.bf16.mxu1 %v1638_v32  ;;  %1566 = vmatpush3.bf16.msra.mxu0 %v1647_v20 }
  0x25   : > { %1385 = vmatmul.mubr.msk.bf16.gmra.mxu0 %vm367_vm0, %v317_v23  ;;  %1397 = vmatmul.mubr.msk.bf16.gmra.mxu1 %vm367_vm0, %v329_v34 }
  0x26   : > { %478 = vmatprep.mubr.bf16.mxu0 %v1662_v2  ;;  %598 = vmatprep.mubr.bf16.mxu1 %v1662_v2 }
  0x27   : > { %1436 = vmatpush3.bf16.msra.mxu1 %v1639_v35  ;;  %1567 = vmatprep.subr.bf16.mxu0 %v1648_v28 }
  0x28   : > { %1437 = vmatprep.subr.bf16.mxu1 %v1640_v54  ;;  %1568 = vmatpush3.bf16.msra.mxu0 %v1648_v28 }
  0x2b   : > { %1438 = vmatpush3.bf16.msra.mxu1 %v1641_v57 }
  0x2c   : > { %1439 = vmatprep.subr.bf16.mxu1 %v1642_v59 }
  0x2d   : > { %1386 = vmatmul.mubr.msk.bf16.gmra.mxu0 %vm367_vm0, %v318_v33  ;;  %1398 = vmatmul.mubr.msk.bf16.gmra.mxu1 %vm367_vm0, %v330_v41 }
  0x2e   : > { %488 = vmatprep.mubr.bf16.mxu0 %v1662_v2 }
  0x2f   : > { %1440 = vmatpush3.bf16.msra.mxu1 %v1643_v60 }
  0x30   : > { %1441 = vmatprep.subr.bf16.mxu1 %v1644_v61 }
  0x33   : > { %1442 = vmatpush3.bf16.msra.mxu1 %v1645_v0 }
  0x35   : > { %1387 = vmatmul.mubr.msk.bf16.gmra.mxu0 %vm367_vm0, %v319_v40 }
  0x36   : > { %498 = vmatprep.mubr.bf16.mxu0 %v1662_v2 }
  0x3d   : > { %1388 = vmatmul.mubr.msk.bf16.gmra.mxu0 %vm367_vm0, %v320_v44 }
  0x3e   : > { %508 = vmatprep.mubr.bf16.mxu0 %v1662_v2 }
  0x45   : > { %1389 = vmatmul.mubr.msk.bf16.gmra.mxu0 %vm367_vm0, %v321_v47 }
  0x46   : > { %518 = vmatprep.mubr.bf16.mxu0 %v1662_v2 }
  0x4d   : > { %1390 = vmatmul.mubr.msk.bf16.gmra.mxu0 %vm367_vm0, %v322_v50 }
  0x4e   : > { %528 = vmatprep.mubr.bf16.mxu0 %v1662_v2 }
  0x55   : > { %1391 = vmatmul.mubr.msk.bf16.gmra.mxu0 %vm367_vm0, %v323_v53 }
  0x56   : > { %538 = vmatprep.mubr.bf16.mxu0 %v1662_v2 }
  0x5d   : > { %1392 = vmatmul.mubr.msk.bf16.gmra.mxu0 %vm367_vm0, %v324_v58 }
  0x5e   : > { %548 = vmatprep.mubr.bf16.mxu0 %v1662_v2 }
  0x65   : > { %1393 = vmatmul.mubr.msk.bf16.gmra.mxu0 %vm367_vm0, %v325_v1 }
  0x66   : > { %558 = vmatprep.mubr.bf16.mxu0 %v1662_v2 }
  0x6d   : > { %1394 = vmatmul.mubr.msk.bf16.gmra.mxu0 %vm367_vm0, %v326_v5 }
  0xd5   : > { %v450_v11 = vpop.f32.mrf.mxu0 }
  0xd6   : > { %v451_v17 = vadd.f32 %v450_v11, %v1850_v13 }
  0xd7   : > { %v452_v14 = vpop.f32.mrf.mxu0 }
  0xd8   : > { %v453_v15 = vadd.f32 %v452_v14, %v1848_v12  ;;  %v609_v26 = vmax.f32 %v451_v17, 0.0 }
  0xd9   : > { %v454_v2 = vpop.f32.mrf.mxu0 }
  0xda   : > { %v455_v16 = vadd.f32 %v454_v2, %v1850_v13  ;;  %v610_v24 = vmax.f32 %v453_v15, 0.0 }
  0xdb   : > { %v456_v18 = vpop.f32.mrf.mxu0 }
  0xdc   : > { %v457_v21 = vadd.f32 %v456_v18, %v1848_v12  ;;  %v611_v22 = vmax.f32 %v455_v16, 0.0 }
  0xdd   : > { %v460_v23 = vpop.f32.mrf.mxu0 }
  0xde   : > { %v612_v25 = vmax.f32 %v457_v21, 0.0  ;;  %v673_v30 = vpack.c.bf16 %v611_v22, %v609_v26  ;;  %v461_v34 = vadd.f32 %v460_v23, %v1850_v13 }
  0xdf   : > { %v462_v27 = vpop.f32.mrf.mxu0 }
  0xe0   : > { %v674_v29 = vpack.c.bf16 %v612_v25, %v610_v24  ;;  %v463_v32 = vadd.f32 %v462_v27, %v1848_v12  ;;  %v613_v41 = vmax.f32 %v461_v34, 0.0 }
  0xe1   : > { %v464_v31 = vpop.f32.mrf.mxu0 }
  0xe2   : > { %v465_v33 = vadd.f32 %v464_v31, %v1850_v13  ;;  %872 = vmatprep.mubr.bf16.mxu1 %v674_v29  ;;  %v614_v39 = vmax.f32 %v463_v32, 0.0 }
  0xe3   : > { %v466_v35 = vpop.f32.mrf.mxu0  ;;  %873 = vmatmul.mubr.bf16.vlgmr.msra.gmra.mxu1 %v673_v30 }
  0xe4   : > { %v467_v36 = vadd.f32 %v466_v35, %v1848_v12  ;;  %v615_v37 = vmax.f32 %v465_v33, 0.0 }
  0xe5   : > { %v470_v38 = vpop.f32.mrf.mxu0 }
  0xe6   : > { %v616_v40 = vmax.f32 %v467_v36, 0.0  ;;  %v675_v44 = vpack.c.bf16 %v615_v37, %v613_v41  ;;  %v471_v48 = vadd.f32 %v470_v38, %v1850_v13 }
  0xe7   : > { %v472_v42 = vpop.f32.mrf.mxu0 }
  0xe8   : > { %v676_v43 = vpack.c.bf16 %v616_v40, %v614_v39  ;;  %v473_v46 = vadd.f32 %v472_v42, %v1848_v12  ;;  %v617_v55 = vmax.f32 %v471_v48, 0.0  ;;  %v1885_v40 = vpop.f32.mrf.mxu1 }
  0xe9   : > { %v474_v45 = vpop.f32.mrf.mxu0 }
  0xea   : > { %v475_v47 = vadd.f32 %v474_v45, %v1850_v13  ;;  %880 = vmatprep.mubr.bf16.mxu1 %v676_v43  ;;  %v618_v53 = vmax.f32 %v473_v46, 0.0  ;;  %v1891_v48 = vpop.f32.mrf.mxu1 }
  0xeb   : > { %v476_v49 = vpop.f32.mrf.mxu0  ;;  %881 = vmatmul.mubr.bf16.gmra.mxu1 %v675_v44 }
  0xec   : > { %v477_v50 = vadd.f32 %v476_v49, %v1848_v12  ;;  %v619_v51 = vmax.f32 %v475_v47, 0.0 }
  0xed   : > { %v480_v52 = vpop.f32.mrf.mxu0 }
  0xee   : > { %v620_v54 = vmax.f32 %v477_v50, 0.0  ;;  %v677_v58 = vpack.c.bf16 %v619_v51, %v617_v55  ;;  %v481_v62 = vadd.f32 %v480_v52, %v1850_v13 }
  0xef   : > { %v482_v56 = vpop.f32.mrf.mxu0 }
  0xf0   : > { %v678_v57 = vpack.c.bf16 %v620_v54, %v618_v53  ;;  %v483_v60 = vadd.f32 %v482_v56, %v1848_v12  ;;  %v621_v6 = vmax.f32 %v481_v62, 0.0  ;;  %v1893_v56 = vpop.f32.mrf.mxu1 }
  0xf1   : > { %v484_v59 = vpop.f32.mrf.mxu0 }
  0xf2   : > { %v485_v61 = vadd.f32 %v484_v59, %v1850_v13  ;;  %888 = vmatprep.mubr.bf16.mxu1 %v678_v57  ;;  %v622_v4 = vmax.f32 %v483_v60, 0.0 }
  0xf3   : > { %v486_v63 = vpop.f32.mrf.mxu0  ;;  %889 = vmatmul.mubr.bf16.gmra.mxu1 %v677_v58 }
  0xf4   : > { %v487_v0 = vadd.f32 %v486_v63, %v1848_v12  ;;  %v623_v1 = vmax.f32 %v485_v61, 0.0 }
  0xf5   : > { %v490_v3 = vpop.f32.mrf.mxu0 }
  0xf6   : > { %v624_v5 = vmax.f32 %v487_v0, 0.0  ;;  %v679_v9 = vpack.c.bf16 %v623_v1, %v621_v6  ;;  %v491_v2 = vadd.f32 %v490_v3, %v1850_v13  ;;  %v1899_v0 = vpop.f32.mrf.mxu1 }
  0xf7   : > { %v492_v7 = vpop.f32.mrf.mxu0 }
  0xf8   : > { %v680_v8 = vpack.c.bf16 %v624_v5, %v622_v4  ;;  %v493_v11 = vadd.f32 %v492_v7, %v1848_v12  ;;  %v625_v21 = vmax.f32 %v491_v2, 0.0 }
  0xf9   : > { %v494_v10 = vpop.f32.mrf.mxu0 }
  0xfa   : > { %v495_v14 = vadd.f32 %v494_v10, %v1850_v13  ;;  %896 = vmatprep.mubr.bf16.mxu1 %v680_v8  ;;  %v626_v19 = vmax.f32 %v493_v11, 0.0 }
  0xfb   : > { %v496_v15 = vpop.f32.mrf.mxu0  ;;  %897 = vmatmul.mubr.bf16.gmra.mxu1 %v679_v9  ;;  %v1901_v9 = vpop.f32.mrf.mxu1 }
  0xfc   : > { %v497_v16 = vadd.f32 %v496_v15, %v1848_v12  ;;  %v627_v17 = vmax.f32 %v495_v14, 0.0 }
  0xfd   : > { %v500_v18 = vpop.f32.mrf.mxu0 }
  0xfe   : > { %v628_v20 = vmax.f32 %v497_v16, 0.0  ;;  %v681_v24 = vpack.c.bf16 %v627_v17, %v625_v21  ;;  %v501_v28 = vadd.f32 %v500_v18, %v1850_v13  ;;  %v1907_v18 = vpop.f32.mrf.mxu1 }
  0xff   : > { %v502_v22 = vpop.f32.mrf.mxu0 }
 0x100   : > { %v682_v23 = vpack.c.bf16 %v628_v20, %v626_v19  ;;  %v503_v26 = vadd.f32 %v502_v22, %v1848_v12  ;;  %v629_v35 = vmax.f32 %v501_v28, 0.0 }
 0x101   : > { %v504_v25 = vpop.f32.mrf.mxu0 }
 0x102   : > { %v505_v27 = vadd.f32 %v504_v25, %v1850_v13  ;;  %904 = vmatprep.mubr.bf16.mxu1 %v682_v23  ;;  %v630_v33 = vmax.f32 %v503_v26, 0.0  ;;  %v1909_v26 = vpop.f32.mrf.mxu1 }
 0x103   : > { %v506_v29 = vpop.f32.mrf.mxu0  ;;  %905 = vmatmul.mubr.bf16.gmra.mxu1 %v681_v24 }
 0x104   : > { %v507_v30 = vadd.f32 %v506_v29, %v1848_v12  ;;  %v631_v31 = vmax.f32 %v505_v27, 0.0 }
 0x105   : > { %v510_v32 = vpop.f32.mrf.mxu0 }
 0x106   : > { %v632_v34 = vmax.f32 %v507_v30, 0.0  ;;  %v683_v38 = vpack.c.bf16 %v631_v31, %v629_v35  ;;  %v511_v43 = vadd.f32 %v510_v32, %v1850_v13  ;;  %v1649_v32 = vld [vmem:[%s2117_s5 + $0x20] sm:$0xff]   ;;  %v586_v35 = vpop.f32.mrf.mxu1 }
 0x107   : > { %v512_v36 = vpop.f32.mrf.mxu0  ;;  %1569 = vmatprep.subr.bf16.mxu0 %v1649_v32 }
 0x108   : > { %v684_v37 = vpack.c.bf16 %v632_v34, %v630_v33  ;;  %v513_v41 = vadd.f32 %v512_v36, %v1848_v12  ;;  %v633_v51 = vmax.f32 %v511_v43, 0.0  ;;  %1570 = vmatpush3.bf16.msra.mxu0 %v1649_v32 }
 0x109   : > { %v514_v39 = vpop.f32.mrf.mxu0 }
 0x10a   : > { %v515_v42 = vadd.f32 %v514_v39, %v1850_v13  ;;  %912 = vmatprep.mubr.bf16.mxu1 %v684_v37  ;;  %v634_v49 = vmax.f32 %v513_v41, 0.0 }
 0x10b   : > { %v516_v44 = vpop.f32.mrf.mxu0  ;;  %913 = vmatmul.mubr.bf16.gmra.mxu1 %v683_v38 }
 0x10c   : > { %v517_v45 = vadd.f32 %v516_v44, %v1848_v12  ;;  %v635_v46 = vmax.f32 %v515_v42, 0.0  ;;  %v1650_v42 = vld [vmem:[%s2117_s5 + $0x18] sm:$0xff]  }
 0x10d   : > { %v520_v47 = vpop.f32.mrf.mxu0  ;;  %1571 = vmatprep.subr.bf16.mxu0 %v1650_v42 }
 0x10e   : > { %v636_v50 = vmax.f32 %v517_v45, 0.0  ;;  %v685_v54 = vpack.c.bf16 %v635_v46, %v633_v51  ;;  %v521_v59 = vadd.f32 %v520_v47, %v1850_v13  ;;  %v1921_v45 = vpop.f32.mrf.mxu1  ;;  %1572 = vmatpush3.bf16.msra.mxu0 %v1650_v42 }
 0x10f   : > { %v522_v52 = vpop.f32.mrf.mxu0 }
 0x110   : > { %v686_v53 = vpack.c.bf16 %v636_v50, %v634_v49  ;;  %v523_v57 = vadd.f32 %v522_v52, %v1848_v12  ;;  %v637_v4 = vmax.f32 %v521_v59, 0.0  ;;  %v1651_v52 = vld [vmem:[%s2117_s5 + $0x10] sm:$0xff]  }
 0x111   : > { %v524_v55 = vpop.f32.mrf.mxu0  ;;  %1573 = vmatprep.subr.bf16.mxu0 %v1651_v52 }
 0x112   : > { %v525_v58 = vadd.f32 %v524_v55, %v1850_v13  ;;  %920 = vmatprep.mubr.bf16.mxu1 %v686_v53  ;;  %v638_v1 = vmax.f32 %v523_v57, 0.0  ;;  %v592_v55 = vpop.f32.mrf.mxu1  ;;  %1574 = vmatpush3.bf16.msra.mxu0 %v1651_v52 }
 0x113   : > { %v526_v60 = vpop.f32.mrf.mxu0  ;;  %921 = vmatmul.mubr.bf16.gmra.mxu1 %v685_v54 }
 0x114   : > { %v527_v61 = vadd.f32 %v526_v60, %v1848_v12  ;;  %v639_v62 = vmax.f32 %v525_v58, 0.0 }
 0x115   : > { %v530_v63 = vpop.f32.mrf.mxu0 }
 0x116   : > { %v640_v3 = vmax.f32 %v527_v61, 0.0  ;;  %v687_v7 = vpack.c.bf16 %v639_v62, %v637_v4  ;;  %v531_v14 = vadd.f32 %v530_v63, %v1850_v13  ;;  %v573_v62 = vadd.f32 %v1891_v48, %v1848_v12 }
 0x117   : > { %v532_v5 = vpop.f32.mrf.mxu0  ;;  %v577_v63 = vadd.f32 %v1899_v0, %v1848_v12 }
 0x118   : > { %v688_v6 = vpack.c.bf16 %v640_v3, %v638_v1  ;;  %v533_v10 = vadd.f32 %v532_v5, %v1848_v12  ;;  %v641_v21 = vmax.f32 %v531_v14, 0.0  ;;  %v1652_v1 = vld [vmem:[%s2117_s5 + $0x8] sm:$0xff]   ;;  %v594_v5 = vpop.f32.mrf.mxu1  ;;  %v658_v48 = vmax.f32 %v573_v62, 0.0  ;;  %v1653_v14 = vld [vmem:[%s2117_s5] sm:$0xff]  }
 0x119   : > { %v534_v8 = vpop.f32.mrf.mxu0  ;;  %1575 = vmatprep.subr.bf16.mxu0 %v1652_v1 }
 0x11a   : > { %v535_v11 = vadd.f32 %v534_v8, %v1850_v13  ;;  %928 = vmatprep.mubr.bf16.mxu1 %v688_v6  ;;  %v642_v19 = vmax.f32 %v533_v10, 0.0  ;;  %1576 = vmatpush3.bf16.msra.mxu0 %v1652_v1 }
 0x11b   : > { %v536_v2 = vpop.f32.mrf.mxu0  ;;  %929 = vmatmul.mubr.bf16.gmra.mxu1 %v687_v7  ;;  %1577 = vmatprep.subr.bf16.mxu0 %v1653_v14 }
 0x11c   : > { %v537_v15 = vadd.f32 %v536_v2, %v1848_v12  ;;  %v643_v16 = vmax.f32 %v535_v11, 0.0  ;;  %v660_v11 = vmax.f32 %v577_v63, 0.0  ;;  %v1967_v63 = vld [vmem:[%s2116_s4] ss:$0 sm:$0xff] }
 0x11d   : > { %v540_v17 = vpop.f32.mrf.mxu0 }
 0x11e   : > { %v644_v20 = vmax.f32 %v537_v15, 0.0  ;;  %v689_v24 = vpack.c.bf16 %v643_v16, %v641_v21  ;;  %v541_v29 = vadd.f32 %v540_v17, %v1850_v13  ;;  %v596_v15 = vpop.f32.mrf.mxu1  ;;  %1578 = vmatpush3.bf16.msra.mxu0 %v1653_v14  ;;  %v698_v21 = vpack.c.bf16 %v660_v11, %v658_v48 }
 0x11f   : > { %v542_v22 = vpop.f32.mrf.mxu0 }
 0x120   : > { %v690_v23 = vpack.c.bf16 %v644_v20, %v642_v19  ;;  %v543_v27 = vadd.f32 %v542_v22, %v1848_v12  ;;  %v645_v38 = vmax.f32 %v541_v29, 0.0  ;;  %v583_v22 = vadd.f32 %v1907_v18, %v1848_v12 }
 0x121   : > { %v544_v25 = vpop.f32.mrf.mxu0  ;;  %v593_v18 = vadd.f32 %v592_v55, %v1848_v12 }
 0x122   : > { %v545_v28 = vadd.f32 %v544_v25, %v1850_v13  ;;  %936 = vmatprep.mubr.bf16.mxu1 %v690_v23  ;;  %v646_v36 = vmax.f32 %v543_v27, 0.0  ;;  %v587_v23 = vadd.f32 %v586_v35, %v1848_v12  ;;  %v575_v27 = vadd.f32 %v1893_v56, %v1850_v13 }
 0x123   : > { %v546_v30 = vpop.f32.mrf.mxu0  ;;  %937 = vmatmul.mubr.bf16.gmra.mxu1 %v689_v24  ;;  %v571_v24 = vadd.f32 %v1885_v40, %v1850_v13  ;;  %v662_v29 = vmax.f32 %v583_v22, 0.0  ;;  %v597_v35 = vadd.f32 %v596_v15, %v1848_v12  ;;  %v581_v40 = vadd.f32 %v1901_v9, %v1850_v13 }
 0x124   : > { %v547_v31 = vadd.f32 %v546_v30, %v1848_v12  ;;  %v647_v33 = vmax.f32 %v545_v28, 0.0  ;;  %v600_v28 = vpop.f32.mrf.mxu1  ;;  %v664_v30 = vmax.f32 %v587_v23, 0.0  ;;  %v659_v32 = vmax.f32 %v575_v27, 0.0 }
 0x125   : > { %v550_v34 = vpop.f32.mrf.mxu0  ;;  %v585_v56 = vadd.f32 %v1909_v26, %v1850_v13  ;;  %v591_v9 = vadd.f32 %v1921_v45, %v1850_v13 }
 0x126   : > { %v648_v37 = vmax.f32 %v547_v31, 0.0  ;;  %v691_v43 = vpack.c.bf16 %v647_v33, %v645_v38  ;;  %v551_v49 = vadd.f32 %v550_v34, %v1850_v13  ;;  %v657_v31 = vmax.f32 %v571_v24, 0.0  ;;  %v602_v33 = vpop.f32.mrf.mxu1 }
 0x127   : > { %v552_v39 = vpop.f32.mrf.mxu0  ;;  %v700_v34 = vpack.c.bf16 %v664_v30, %v662_v29  ;;  %v666_v38 = vmax.f32 %v593_v18, 0.0  ;;  %v663_v42 = vmax.f32 %v585_v56, 0.0  ;;  %v665_v52 = vmax.f32 %v591_v9, 0.0 }
 0x128   : > { %v692_v41 = vpack.c.bf16 %v648_v37, %v646_v36  ;;  %v553_v46 = vadd.f32 %v552_v39, %v1848_v12  ;;  %v649_v59 = vmax.f32 %v551_v49, 0.0  ;;  %v697_v36 = vpack.c.bf16 %v659_v32, %v657_v31  ;;  %v604_v37 = vpop.f32.mrf.mxu1 }
 0x129   : > { %v554_v44 = vpop.f32.mrf.mxu0  ;;  %v668_v39 = vmax.f32 %v597_v35, 0.0 }
 0x12a   : > { %v555_v47 = vadd.f32 %v554_v44, %v1850_v13  ;;  %944 = vmatprep.mubr.bf16.mxu1 %v692_v41  ;;  %v650_v57 = vmax.f32 %v553_v46, 0.0  ;;  %v661_v41 = vmax.f32 %v581_v40, 0.0  ;;  %v603_v46 = vadd.f32 %v602_v33, %v1848_v12 }
 0x12b   : > { %v556_v50 = vpop.f32.mrf.mxu0  ;;  %945 = vmatmul.mubr.bf16.gmra.mxu1 %v691_v43  ;;  %v606_v43 = vpop.f32.mrf.mxu1  ;;  %v702_v44 = vpack.c.bf16 %v668_v39, %v666_v38 }
 0x12c   : > { %v557_v51 = vadd.f32 %v556_v50, %v1848_v12  ;;  %v651_v53 = vmax.f32 %v555_v47, 0.0  ;;  %v607_v47 = vadd.f32 %v606_v43, %v1848_v12  ;;  %v699_v49 = vpack.c.bf16 %v663_v42, %v661_v41 }
 0x12d   : > { %v560_v54 = vpop.f32.mrf.mxu0  ;;  %v595_v50 = vadd.f32 %v594_v5, %v1850_v13  ;;  %v670_v26 = vmax.f32 %v603_v46, 0.0 }
 0x12e   : > { %v652_v58 = vmax.f32 %v557_v51, 0.0  ;;  %v693_v3 = vpack.c.bf16 %v651_v53, %v649_v59  ;;  %v561_v8 = vadd.f32 %v560_v54, %v1850_v13  ;;  %v672_v51 = vmax.f32 %v607_v47, 0.0 }
 0x12f   : > { %v562_v60 = vpop.f32.mrf.mxu0  ;;  %v667_v53 = vmax.f32 %v595_v50, 0.0 }
 0x130   : > { %v694_v61 = vpack.c.bf16 %v652_v58, %v650_v57  ;;  %v563_v6 = vadd.f32 %v562_v60, %v1848_v12  ;;  %v653_v19 = vmax.f32 %v561_v8, 0.0  ;;  %v704_v54 = vpack.c.bf16 %v672_v51, %v670_v26 }
 0x131   : > { %v564_v4 = vpop.f32.mrf.mxu0  ;;  %v701_v55 = vpack.c.bf16 %v667_v53, %v665_v52  ;;  %v601_v57 = vadd.f32 %v600_v28, %v1850_v13  ;;  %v605_v58 = vadd.f32 %v604_v37, %v1850_v13 }
 0x132   : > { %v565_v7 = vadd.f32 %v564_v4, %v1850_v13  ;;  %952 = vmatprep.mubr.bf16.mxu1 %v694_v61  ;;  %v654_v16 = vmax.f32 %v563_v6, 0.0 }
 0x133   : > { %v566_v10 = vpop.f32.mrf.mxu0  ;;  %953 = vmatmul.mubr.bf16.gmra.mxu1 %v693_v3  ;;  %v671_v59 = vmax.f32 %v605_v58, 0.0 }
 0x134   : > { %v567_v0 = vadd.f32 %v566_v10, %v1848_v12  ;;  %v655_v2 = vmax.f32 %v565_v7, 0.0  ;;  %v669_v12 = vmax.f32 %v601_v57, 0.0 }
 0x136   : > { %v656_v17 = vmax.f32 %v567_v0, 0.0  ;;  %v695_v25 = vpack.c.bf16 %v655_v2, %v653_v19  ;;  %v703_v60 = vpack.c.bf16 %v671_v59, %v669_v12 }
 0x138   : > { %v696_v20 = vpack.c.bf16 %v656_v17, %v654_v16 }
 0x13a   : > { %960 = vmatprep.mubr.bf16.mxu1 %v696_v20 }
 0x13b   : > { %961 = vmatmul.mubr.bf16.gmra.mxu1 %v695_v25 }
 0x13c   : > { %968 = vmatprep.mubr.bf16.mxu1 %v698_v21 }
 0x143   : > { %969 = vmatmul.mubr.bf16.gmra.mxu1 %v697_v36 }
 0x144   : > { %976 = vmatprep.mubr.bf16.mxu1 %v700_v34 }
 0x14b   : > { %977 = vmatmul.mubr.bf16.gmra.mxu1 %v699_v49 }
 0x14c   : > { %984 = vmatprep.mubr.bf16.mxu1 %v702_v44 }
 0x153   : > { %985 = vmatmul.mubr.bf16.gmra.mxu1 %v701_v55 }
 0x154   : > { %992 = vmatprep.mubr.bf16.mxu1 %v704_v54 }
 0x15b   : > { %993 = vmatmul.mubr.bf16.gmra.mxu1 %v703_v60 }
 0x1a3   : > { %v1443_v45 = vpop.f32.mrf.mxu1 }
 0x1a5   : > { %v1444_v61 = vpop.f32.mrf.mxu1 }
 0x1a6   : > { %v1445_v62 = vadd.f32 %v1444_v61, %v1443_v45 }
 0x1a7   : > { %v1446_v1 = vpop.f32.mrf.mxu1 }
 0x1a8   : > { %v875_v4 = vadd.f32 %v1445_v62, %v1967_v63 }
 0x1a9   : > { %v1447_v3 = vpop.f32.mrf.mxu1 }
 0x1aa   : > { %v1448_v5 = vadd.f32 %v1447_v3, %v1446_v1  ;;  %v1001_v8 = vmax.f32 %v875_v4, 0.0 }
 0x1ab   : > { %v1449_v13 = vpop.f32.mrf.mxu1 }
 0x1ac   : > { %v878_v6 = vadd.f32 %v1448_v5, %v1967_v63 }
 0x1ad   : > { %v1450_v7 = vpop.f32.mrf.mxu1 }
 0x1ae   : > { %v1002_v10 = vmax.f32 %v878_v6, 0.0  ;;  %v1451_v48 = vadd.f32 %v1450_v7, %v1449_v13 }
 0x1af   : > { %v1452_v0 = vpop.f32.mrf.mxu1 }
 0x1b0   : > { %v1033_v11 = vpack.c.bf16 %v1002_v10, %v1001_v8  ;;  %v883_v2 = vadd.f32 %v1451_v48, %v1967_v63 }
 0x1b1   : > { %v1453_v14 = vpop.f32.mrf.mxu1 }
 0x1b2   : > { %v1454_v15 = vadd.f32 %v1453_v14, %v1452_v0  ;;  %1579 = vmatprep.mubr.bf16.mxu0 %v1033_v11  ;;  %v1003_v20 = vmax.f32 %v883_v2, 0.0 }
 0x1b3   : > { %v1455_v16 = vpop.f32.mrf.mxu1 }
 0x1b4   : > { %v886_v17 = vadd.f32 %v1454_v15, %v1967_v63 }
 0x1b5   : > { %v1456_v19 = vpop.f32.mrf.mxu1 }
 0x1b6   : > { %v1004_v21 = vmax.f32 %v886_v17, 0.0  ;;  %v1457_v22 = vadd.f32 %v1456_v19, %v1455_v16 }
 0x1b7   : > { %v1458_v23 = vpop.f32.mrf.mxu1 }
 0x1b8   : > { %v1034_v24 = vpack.c.bf16 %v1004_v21, %v1003_v20  ;;  %v891_v27 = vadd.f32 %v1457_v22, %v1967_v63 }
 0x1b9   : > { %v1459_v25 = vpop.f32.mrf.mxu1 }
 0x1ba   : > { %v1460_v28 = vadd.f32 %v1459_v25, %v1458_v23  ;;  %1580 = vmatmul.mubr.bf16.vlgmr.msra.gmra.mxu0 %v1034_v24  ;;  %v1005_v32 = vmax.f32 %v891_v27, 0.0 }
 0x1bb   : > { %v1461_v29 = vpop.f32.mrf.mxu1 }
 0x1bc   : > { %v894_v30 = vadd.f32 %v1460_v28, %v1967_v63 }
 0x1bd   : > { %v1462_v31 = vpop.f32.mrf.mxu1 }
 0x1be   : > { %v1006_v33 = vmax.f32 %v894_v30, 0.0  ;;  %v1463_v34 = vadd.f32 %v1462_v31, %v1461_v29 }
 0x1bf   : > { %v1464_v18 = vpop.f32.mrf.mxu1 }
 0x1c0   : > { %v1035_v35 = vpack.c.bf16 %v1006_v33, %v1005_v32  ;;  %v899_v40 = vadd.f32 %v1463_v34, %v1967_v63 }
 0x1c1   : > { %v1465_v36 = vpop.f32.mrf.mxu1 }
 0x1c2   : > { %v1466_v56 = vadd.f32 %v1465_v36, %v1464_v18  ;;  %1583 = vmatprep.mubr.bf16.mxu0 %v1035_v35  ;;  %v1007_v41 = vmax.f32 %v899_v40, 0.0 }
 0x1c3   : > { %v1467_v37 = vpop.f32.mrf.mxu1 }
 0x1c4   : > { %v902_v38 = vadd.f32 %v1466_v56, %v1967_v63 }
 0x1c5   : > { %v1468_v39 = vpop.f32.mrf.mxu1 }
 0x1c6   : > { %v1008_v42 = vmax.f32 %v902_v38, 0.0  ;;  %v1469_v43 = vadd.f32 %v1468_v39, %v1467_v37 }
 0x1c7   : > { %v1470_v44 = vpop.f32.mrf.mxu1 }
 0x1c8   : > { %v1036_v46 = vpack.c.bf16 %v1008_v42, %v1007_v41  ;;  %v907_v49 = vadd.f32 %v1469_v43, %v1967_v63 }
 0x1c9   : > { %v1471_v47 = vpop.f32.mrf.mxu1 }
 0x1ca   : > { %v1472_v9 = vadd.f32 %v1471_v47, %v1470_v44  ;;  %1584 = vmatmul.mubr.bf16.gmra.mxu0 %v1036_v46  ;;  %v1009_v52 = vmax.f32 %v907_v49, 0.0 }
 0x1cb   : > { %v1473_v50 = vpop.f32.mrf.mxu1 }
 0x1cc   : > { %v910_v26 = vadd.f32 %v1472_v9, %v1967_v63 }
 0x1cd   : > { %v1474_v51 = vpop.f32.mrf.mxu1 }
 0x1ce   : > { %v1010_v53 = vmax.f32 %v910_v26, 0.0  ;;  %v1475_v54 = vadd.f32 %v1474_v51, %v1473_v50 }
 0x1cf   : > { %v1476_v55 = vpop.f32.mrf.mxu1 }
 0x1d0   : > { %v1037_v57 = vpack.c.bf16 %v1010_v53, %v1009_v52  ;;  %v915_v12 = vadd.f32 %v1475_v54, %v1967_v63 }
 0x1d1   : > { %v1477_v58 = vpop.f32.mrf.mxu1 }
 0x1d2   : > { %v1478_v59 = vadd.f32 %v1477_v58, %v1476_v55  ;;  %1587 = vmatprep.mubr.bf16.mxu0 %v1037_v57  ;;  %v1011_v62 = vmax.f32 %v915_v12, 0.0 }
 0x1d3   : > { %v1479_v60 = vpop.f32.mrf.mxu1 }
 0x1d4   : > { %v918_v45 = vadd.f32 %v1478_v59, %v1967_v63 }
 0x1d5   : > { %v1480_v61 = vpop.f32.mrf.mxu1 }
 0x1d6   : > { %v1012_v1 = vmax.f32 %v918_v45, 0.0  ;;  %v1481_v3 = vadd.f32 %v1480_v61, %v1479_v60 }
 0x1d7   : > { %v1482_v4 = vpop.f32.mrf.mxu1 }
 0x1d8   : > { %v1038_v5 = vpack.c.bf16 %v1012_v1, %v1011_v62  ;;  %v923_v6 = vadd.f32 %v1481_v3, %v1967_v63 }
 0x1d9   : > { %v1483_v13 = vpop.f32.mrf.mxu1 }
 0x1da   : > { %v1484_v7 = vadd.f32 %v1483_v13, %v1482_v4  ;;  %1588 = vmatmul.mubr.bf16.gmra.mxu0 %v1038_v5  ;;  %v1013_v0 = vmax.f32 %v923_v6, 0.0 }
 0x1db   : > { %v1485_v8 = vpop.f32.mrf.mxu1 }
 0x1dc   : > { %v926_v10 = vadd.f32 %v1484_v7, %v1967_v63 }
 0x1dd   : > { %v1486_v48 = vpop.f32.mrf.mxu1 }
 0x1de   : > { %v1014_v11 = vmax.f32 %v926_v10, 0.0  ;;  %v1487_v14 = vadd.f32 %v1486_v48, %v1485_v8 }
 0x1df   : > { %v1488_v2 = vpop.f32.mrf.mxu1 }
 0x1e0   : > { %v1039_v15 = vpack.c.bf16 %v1014_v11, %v1013_v0  ;;  %v931_v17 = vadd.f32 %v1487_v14, %v1967_v63 }
 0x1e1   : > { %v1489_v16 = vpop.f32.mrf.mxu1 }
 0x1e2   : > { %v1490_v19 = vadd.f32 %v1489_v16, %v1488_v2  ;;  %1591 = vmatprep.mubr.bf16.mxu0 %v1039_v15  ;;  %v1015_v23 = vmax.f32 %v931_v17, 0.0 }
 0x1e3   : > { %v1491_v20 = vpop.f32.mrf.mxu1 }
 0x1e4   : > { %v934_v21 = vadd.f32 %v1490_v19, %v1967_v63 }
 0x1e5   : > { %v1492_v22 = vpop.f32.mrf.mxu1 }
 0x1e6   : > { %v1016_v24 = vmax.f32 %v934_v21, 0.0  ;;  %v1493_v25 = vadd.f32 %v1492_v22, %v1491_v20 }
 0x1e7   : > { %v1494_v27 = vpop.f32.mrf.mxu1 }
 0x1e8   : > { %v1040_v28 = vpack.c.bf16 %v1016_v24, %v1015_v23  ;;  %v939_v30 = vadd.f32 %v1493_v25, %v1967_v63 }
 0x1e9   : > { %v1495_v29 = vpop.f32.mrf.mxu1 }
 0x1ea   : > { %v1496_v31 = vadd.f32 %v1495_v29, %v1494_v27  ;;  %1592 = vmatmul.mubr.bf16.gmra.mxu0 %v1040_v28  ;;  %v1017_v18 = vmax.f32 %v939_v30, 0.0 }
 0x1eb   : > { %v1497_v32 = vpop.f32.mrf.mxu1 }
 0x1ec   : > { %v942_v33 = vadd.f32 %v1496_v31, %v1967_v63 }
 0x1ed   : > { %v1498_v34 = vpop.f32.mrf.mxu1 }
 0x1ee   : > { %v1018_v35 = vmax.f32 %v942_v33, 0.0  ;;  %v1499_v36 = vadd.f32 %v1498_v34, %v1497_v32 }
 0x1ef   : > { %v1500_v40 = vpop.f32.mrf.mxu1 }
 0x1f0   : > { %v1041_v56 = vpack.c.bf16 %v1018_v35, %v1017_v18  ;;  %v947_v38 = vadd.f32 %v1499_v36, %v1967_v63 }
 0x1f1   : > { %v1501_v37 = vpop.f32.mrf.mxu1 }
 0x1f2   : > { %v1502_v39 = vadd.f32 %v1501_v37, %v1500_v40  ;;  %1595 = vmatprep.mubr.bf16.mxu0 %v1041_v56  ;;  %v1019_v44 = vmax.f32 %v947_v38, 0.0 }
 0x1f3   : > { %v1503_v41 = vpop.f32.mrf.mxu1 }
 0x1f4   : > { %v950_v42 = vadd.f32 %v1502_v39, %v1967_v63 }
 0x1f5   : > { %v1504_v43 = vpop.f32.mrf.mxu1 }
 0x1f6   : > { %v1020_v46 = vmax.f32 %v950_v42, 0.0  ;;  %v1505_v47 = vadd.f32 %v1504_v43, %v1503_v41 }
 0x1f7   : > { %v1506_v49 = vpop.f32.mrf.mxu1 }
 0x1f8   : > { %v1042_v9 = vpack.c.bf16 %v1020_v46, %v1019_v44  ;;  %v955_v26 = vadd.f32 %v1505_v47, %v1967_v63 }
 0x1f9   : > { %v1507_v50 = vpop.f32.mrf.mxu1 }
 0x1fa   : > { %v1508_v51 = vadd.f32 %v1507_v50, %v1506_v49  ;;  %1596 = vmatmul.mubr.bf16.gmra.mxu0 %v1042_v9  ;;  %v1021_v55 = vmax.f32 %v955_v26, 0.0  ;;  %v2004_v9 = vld [vmem:[%s2118_s6] ss:$0 sm:$0xff] }
 0x1fb   : > { %v1509_v52 = vpop.f32.mrf.mxu1 }
 0x1fc   : > { %v958_v53 = vadd.f32 %v1508_v51, %v1967_v63 }
 0x1fd   : > { %v1510_v54 = vpop.f32.mrf.mxu1 }
 0x1fe   : > { %v1022_v57 = vmax.f32 %v958_v53, 0.0  ;;  %v1511_v58 = vadd.f32 %v1510_v54, %v1509_v52 }
 0x1ff   : > { %v1512_v12 = vpop.f32.mrf.mxu1 }
 0x200   : > { %v1043_v59 = vpack.c.bf16 %v1022_v57, %v1021_v55  ;;  %v963_v45 = vadd.f32 %v1511_v58, %v1967_v63 }
 0x201   : > { %v1513_v60 = vpop.f32.mrf.mxu1 }
 0x202   : > { %v1514_v61 = vadd.f32 %v1513_v60, %v1512_v12  ;;  %1599 = vmatprep.mubr.bf16.mxu0 %v1043_v59  ;;  %v1023_v4 = vmax.f32 %v963_v45, 0.0 }
 0x203   : > { %v1515_v62 = vpop.f32.mrf.mxu1 }
 0x204   : > { %v966_v1 = vadd.f32 %v1514_v61, %v1967_v63 }
 0x205   : > { %v1516_v3 = vpop.f32.mrf.mxu1 }
 0x206   : > { %v1024_v5 = vmax.f32 %v966_v1, 0.0  ;;  %v1517_v13 = vadd.f32 %v1516_v3, %v1515_v62 }
 0x207   : > { %v1518_v6 = vpop.f32.mrf.mxu1 }
 0x208   : > { %v1044_v7 = vpack.c.bf16 %v1024_v5, %v1023_v4  ;;  %v971_v10 = vadd.f32 %v1517_v13, %v1967_v63 }
 0x209   : > { %v1519_v8 = vpop.f32.mrf.mxu1 }
 0x20a   : > { %v1520_v48 = vadd.f32 %v1519_v8, %v1518_v6  ;;  %1600 = vmatmul.mubr.bf16.gmra.mxu0 %v1044_v7  ;;  %v1025_v2 = vmax.f32 %v971_v10, 0.0 }
 0x20b   : > { %v1521_v0 = vpop.f32.mrf.mxu1 }
 0x20c   : > { %v974_v11 = vadd.f32 %v1520_v48, %v1967_v63 }
 0x20d   : > { %v1522_v14 = vpop.f32.mrf.mxu1 }
 0x20e   : > { %v1026_v15 = vmax.f32 %v974_v11, 0.0  ;;  %v1523_v16 = vadd.f32 %v1522_v14, %v1521_v0 }
 0x20f   : > { %v1524_v17 = vpop.f32.mrf.mxu1 }
 0x210   : > { %v1045_v19 = vpack.c.bf16 %v1026_v15, %v1025_v2  ;;  %v979_v21 = vadd.f32 %v1523_v16, %v1967_v63 }
 0x211   : > { %v1525_v20 = vpop.f32.mrf.mxu1 }
 0x212   : > { %v1526_v22 = vadd.f32 %v1525_v20, %v1524_v17  ;;  %1603 = vmatprep.mubr.bf16.mxu0 %v1045_v19  ;;  %v1027_v27 = vmax.f32 %v979_v21, 0.0 }
 0x213   : > { %v1527_v23 = vpop.f32.mrf.mxu1 }
 0x214   : > { %v982_v24 = vadd.f32 %v1526_v22, %v1967_v63 }
 0x215   : > { %v1528_v25 = vpop.f32.mrf.mxu1 }
 0x216   : > { %v1028_v28 = vmax.f32 %v982_v24, 0.0  ;;  %v1529_v29 = vadd.f32 %v1528_v25, %v1527_v23 }
 0x217   : > { %v1530_v30 = vpop.f32.mrf.mxu1 }
 0x218   : > { %v1046_v31 = vpack.c.bf16 %v1028_v28, %v1027_v27  ;;  %v987_v33 = vadd.f32 %v1529_v29, %v1967_v63 }
 0x219   : > { %v1531_v32 = vpop.f32.mrf.mxu1 }
 0x21a   : > { %v1532_v34 = vadd.f32 %v1531_v32, %v1530_v30  ;;  %1604 = vmatmul.mubr.bf16.gmra.mxu0 %v1046_v31  ;;  %v1029_v40 = vmax.f32 %v987_v33, 0.0 }
 0x21b   : > { %v1533_v18 = vpop.f32.mrf.mxu1 }
 0x21c   : > { %v990_v35 = vadd.f32 %v1532_v34, %v1967_v63 }
 0x21d   : > { %v1534_v36 = vpop.f32.mrf.mxu1 }
 0x21e   : > { %v1030_v56 = vmax.f32 %v990_v35, 0.0  ;;  %v1535_v37 = vadd.f32 %v1534_v36, %v1533_v18 }
 0x21f   : > { %v1536_v38 = vpop.f32.mrf.mxu1 }
 0x220   : > { %v1047_v39 = vpack.c.bf16 %v1030_v56, %v1029_v40  ;;  %v995_v42 = vadd.f32 %v1535_v37, %v1967_v63 }
 0x221   : > { %v1537_v41 = vpop.f32.mrf.mxu1 }
 0x222   : > { %v1538_v43 = vadd.f32 %v1537_v41, %v1536_v38  ;;  %1607 = vmatprep.mubr.bf16.mxu0 %v1047_v39  ;;  %v1031_v46 = vmax.f32 %v995_v42, 0.0 }
 0x224   : > { %v998_v44 = vadd.f32 %v1538_v43, %v1967_v63 }
 0x226   : > { %v1032_v47 = vmax.f32 %v998_v44, 0.0 }
 0x228   : > { %v1048_v49 = vpack.c.bf16 %v1032_v47, %v1031_v46 }
 0x22a   : > { %1608 = vmatmul.mubr.bf16.gmra.mxu0 %v1048_v49 }
 0x27a   : > { %v1581_v63 = vpop.f32.mrf.mxu0 }
 0x27b   : > { %v1163_v50 = vadd.f32 %v1581_v63, %v2004_v9 }
 0x27c   : > { %v1154_v26 = vpop.f32.mrf.mxu0 }
 0x27d   : > { %1284 = vst.msk [vmem:[%s2011_s11 + $0x10] sm:$0xff] %vm1281_vm1, %v1163_v50  ;;  %v1155_v51 = vadd.f32 %v2004_v9, %v1154_v26 }
 0x27e   : > { %v1582_v52 = vpop.f32.mrf.mxu0 }
 0x27f   : > { %1282 = vst.msk [vmem:[%s2011_s11] sm:$0xff] %vm1281_vm1, %v1155_v51  ;;  %v1166_v53 = vadd.f32 %v1582_v52, %v2004_v9 }
 0x280   : > { %v1157_v54 = vpop.f32.mrf.mxu0 }
 0x281   : > { %1285 = vst.msk [vmem:[%s2011_s11 + $0x18] sm:$0xff] %vm1281_vm1, %v1166_v53  ;;  %v1158_v55 = vadd.f32 %v2004_v9, %v1157_v54 }
 0x283   : > { %1283 = vst.msk [vmem:[%s2011_s11 + $0x8] sm:$0xff] %vm1281_vm1, %v1158_v55 }
 0x28a   : > { %v1585_v57 = vpop.f32.mrf.mxu0 }
 0x28b   : > { %v1179_v58 = vadd.f32 %v1585_v57, %v2004_v9 }
 0x28c   : > { %v1170_v12 = vpop.f32.mrf.mxu0 }
 0x28d   : > { %1288 = vst.msk [vmem:[%s2011_s11 + $0x30] sm:$0xff] %vm1281_vm1, %v1179_v58  ;;  %v1171_v59 = vadd.f32 %v2004_v9, %v1170_v12 }
 0x28e   : > { %v1586_v60 = vpop.f32.mrf.mxu0 }
 0x28f   : > { %1286 = vst.msk [vmem:[%s2011_s11 + $0x20] sm:$0xff] %vm1281_vm1, %v1171_v59  ;;  %v1182_v45 = vadd.f32 %v1586_v60, %v2004_v9 }
 0x290   : > { %v1173_v61 = vpop.f32.mrf.mxu0 }
 0x291   : > { %1289 = vst.msk [vmem:[%s2011_s11 + $0x38] sm:$0xff] %vm1281_vm1, %v1182_v45  ;;  %v1174_v62 = vadd.f32 %v2004_v9, %v1173_v61 }
 0x293   : > { %1287 = vst.msk [vmem:[%s2011_s11 + $0x28] sm:$0xff] %vm1281_vm1, %v1174_v62 }
 0x29a   : > { %v1589_v1 = vpop.f32.mrf.mxu0 }
 0x29b   : > { %v1195_v3 = vadd.f32 %v1589_v1, %v2004_v9 }
 0x29c   : > { %v1186_v4 = vpop.f32.mrf.mxu0 }
 0x29d   : > { %1292 = vst.msk [vmem:[%s2011_s11 + $0x50] sm:$0xff] %vm1281_vm1, %v1195_v3  ;;  %v1187_v5 = vadd.f32 %v2004_v9, %v1186_v4 }
 0x29e   : > { %v1590_v13 = vpop.f32.mrf.mxu0 }
 0x29f   : > { %1290 = vst.msk [vmem:[%s2011_s11 + $0x40] sm:$0xff] %vm1281_vm1, %v1187_v5  ;;  %v1198_v6 = vadd.f32 %v1590_v13, %v2004_v9 }
 0x2a0   : > { %v1189_v7 = vpop.f32.mrf.mxu0 }
 0x2a1   : > { %1293 = vst.msk [vmem:[%s2011_s11 + $0x58] sm:$0xff] %vm1281_vm1, %v1198_v6  ;;  %v1190_v8 = vadd.f32 %v2004_v9, %v1189_v7 }
 0x2a3   : > { %1291 = vst.msk [vmem:[%s2011_s11 + $0x48] sm:$0xff] %vm1281_vm1, %v1190_v8 }
 0x2aa   : > { %v1593_v10 = vpop.f32.mrf.mxu0 }
 0x2ab   : > { %v1211_v48 = vadd.f32 %v1593_v10, %v2004_v9 }
 0x2ac   : > { %v1202_v0 = vpop.f32.mrf.mxu0 }
 0x2ad   : > { %1296 = vst.msk [vmem:[%s2011_s11 + $0x70] sm:$0xff] %vm1281_vm1, %v1211_v48  ;;  %v1203_v11 = vadd.f32 %v2004_v9, %v1202_v0 }
 0x2ae   : > { %v1594_v14 = vpop.f32.mrf.mxu0 }
 0x2af   : > { %1294 = vst.msk [vmem:[%s2011_s11 + $0x60] sm:$0xff] %vm1281_vm1, %v1203_v11  ;;  %v1214_v2 = vadd.f32 %v1594_v14, %v2004_v9 }
 0x2b0   : > { %v1205_v15 = vpop.f32.mrf.mxu0 }
 0x2b1   : > { %1297 = vst.msk [vmem:[%s2011_s11 + $0x78] sm:$0xff] %vm1281_vm1, %v1214_v2  ;;  %v1206_v16 = vadd.f32 %v2004_v9, %v1205_v15 }
 0x2b3   : > { %1295 = vst.msk [vmem:[%s2011_s11 + $0x68] sm:$0xff] %vm1281_vm1, %v1206_v16 }
 0x2ba   : > { %v1597_v17 = vpop.f32.mrf.mxu0 }
 0x2bb   : > { %v1227_v19 = vadd.f32 %v1597_v17, %v2004_v9 }
 0x2bc   : > { %v1218_v20 = vpop.f32.mrf.mxu0 }
 0x2bd   : > { %1300 = vst.msk [vmem:[%s2011_s11 + $0x90] sm:$0xff] %vm1281_vm1, %v1227_v19  ;;  %v1219_v21 = vadd.f32 %v2004_v9, %v1218_v20 }
 0x2be   : > { %v1598_v22 = vpop.f32.mrf.mxu0 }
 0x2bf   : > { %1298 = vst.msk [vmem:[%s2011_s11 + $0x80] sm:$0xff] %vm1281_vm1, %v1219_v21  ;;  %v1230_v23 = vadd.f32 %v1598_v22, %v2004_v9 }
 0x2c0   : > { %v1221_v24 = vpop.f32.mrf.mxu0 }
 0x2c1   : > { %1301 = vst.msk [vmem:[%s2011_s11 + $0x98] sm:$0xff] %vm1281_vm1, %v1230_v23  ;;  %v1222_v25 = vadd.f32 %v2004_v9, %v1221_v24 }
 0x2c3   : > { %1299 = vst.msk [vmem:[%s2011_s11 + $0x88] sm:$0xff] %vm1281_vm1, %v1222_v25 }
 0x2ca   : > { %v1601_v27 = vpop.f32.mrf.mxu0 }
 0x2cb   : > { %v1243_v28 = vadd.f32 %v1601_v27, %v2004_v9 }
 0x2cc   : > { %v1234_v29 = vpop.f32.mrf.mxu0 }
 0x2cd   : > { %1304 = vst.msk [vmem:[%s2011_s11 + $0xb0] sm:$0xff] %vm1281_vm1, %v1243_v28  ;;  %v1235_v30 = vadd.f32 %v2004_v9, %v1234_v29 }
 0x2ce   : > { %v1602_v31 = vpop.f32.mrf.mxu0 }
 0x2cf   : > { %1302 = vst.msk [vmem:[%s2011_s11 + $0xa0] sm:$0xff] %vm1281_vm1, %v1235_v30  ;;  %v1246_v32 = vadd.f32 %v1602_v31, %v2004_v9 }
 0x2d0   : > { %v1237_v33 = vpop.f32.mrf.mxu0 }
 0x2d1   : > { %1305 = vst.msk [vmem:[%s2011_s11 + $0xb8] sm:$0xff] %vm1281_vm1, %v1246_v32  ;;  %v1238_v34 = vadd.f32 %v2004_v9, %v1237_v33 }
 0x2d3   : > { %1303 = vst.msk [vmem:[%s2011_s11 + $0xa8] sm:$0xff] %vm1281_vm1, %v1238_v34 }
 0x2da   : > { %v1605_v18 = vpop.f32.mrf.mxu0 }
 0x2db   : > { %v1259_v35 = vadd.f32 %v1605_v18, %v2004_v9 }
 0x2dc   : > { %v1250_v36 = vpop.f32.mrf.mxu0 }
 0x2dd   : > { %1308 = vst.msk [vmem:[%s2011_s11 + $0xd0] sm:$0xff] %vm1281_vm1, %v1259_v35  ;;  %v1251_v40 = vadd.f32 %v2004_v9, %v1250_v36 }
 0x2de   : > { %v1606_v56 = vpop.f32.mrf.mxu0 }
 0x2df   : > { %1306 = vst.msk [vmem:[%s2011_s11 + $0xc0] sm:$0xff] %vm1281_vm1, %v1251_v40  ;;  %v1262_v37 = vadd.f32 %v1606_v56, %v2004_v9 }
 0x2e0   : > { %v1253_v38 = vpop.f32.mrf.mxu0 }
 0x2e1   : > { %1309 = vst.msk [vmem:[%s2011_s11 + $0xd8] sm:$0xff] %vm1281_vm1, %v1262_v37  ;;  %v1254_v39 = vadd.f32 %v2004_v9, %v1253_v38 }
 0x2e3   : > { %1307 = vst.msk [vmem:[%s2011_s11 + $0xc8] sm:$0xff] %vm1281_vm1, %v1254_v39 }
 0x2ea   : > { %v1609_v41 = vpop.f32.mrf.mxu0 }
 0x2eb   : > { %v1275_v42 = vadd.f32 %v1609_v41, %v2004_v9 }
 0x2ec   : > { %v1266_v43 = vpop.f32.mrf.mxu0 }
 0x2ed   : > { %1312 = vst.msk [vmem:[%s2011_s11 + $0xf0] sm:$0xff] %vm1281_vm1, %v1275_v42  ;;  %v1267_v44 = vadd.f32 %v2004_v9, %v1266_v43 }
 0x2ee   : > { %v1610_v46 = vpop.f32.mrf.mxu0 }
 0x2ef   : > { %1310 = vst.msk [vmem:[%s2011_s11 + $0xe0] sm:$0xff] %vm1281_vm1, %v1267_v44  ;;  %v1278_v47 = vadd.f32 %v1610_v46, %v2004_v9 }
 0x2f0   : > { %v1269_v49 = vpop.f32.mrf.mxu0 }
 0x2f1   : > { %1313 = vst.msk [vmem:[%s2011_s11 + $0xf8] sm:$0xff] %vm1281_vm1, %v1278_v47  ;;  %v1270_v63 = vadd.f32 %v2004_v9, %v1269_v49 }
 0x2f3   : > { %1311 = vst.msk [vmem:[%s2011_s11 + $0xe8] sm:$0xff] %vm1281_vm1, %v1270_v63 }
 0x2f4 PF: > { %s17_s24 = sadd.s32 1, %s1660_s24  }
 0x2f5   : > { %p14_p4 = scmp.ge.s32.totalorder %s17_s24, 4  }
 0x2f7   :  { %16 = sbr.rel (!%p14_p4) target bundleno = 1 (0x1), region = 78 }

</bundles_post_ra>
